<compile_context>
chip_gen: v6e
topology: v6e:2x2x1
jax: 0.10.0
libtpu: 0.0.40
codegen_flags: <defaults>
</compile_context>

<pallas_src>
import jax
import jax.numpy as jnp
from jax.experimental import pallas as pl
from jax.experimental.pallas import tpu as pltpu

LANE = 128          # TPU lane width (last-dim vreg width)
SUBLANE_BF16 = 16   # bf16 rows per sublane group


def _round_up(n, m):
    return ((n + m - 1) // m) * m


def mlp_kernel(x_ref,
               w1_ref, b1_ref,
               w2_ref, b2_ref,
               w3_ref, b3_ref,
               w4_ref, b4_ref,
               w5_ref, b5_ref,
               o_ref):
    """All 5 matmuls fused: bf16 operands -> MXU, f32 accumulate, f32 bias+ReLU,
    re-cast to bf16 between layers. Output tile is lane-dense (block_b, 128)."""
    h = x_ref[...]                                             # bf16 (block_b, 128)
    for w_ref, b_ref in ((w1_ref, b1_ref), (w2_ref, b2_ref),
                         (w3_ref, b3_ref), (w4_ref, b4_ref)):
        acc = jnp.dot(h, w_ref[...], preferred_element_type=jnp.float32)
        h = jnp.maximum(acc + b_ref[...], 0.0).astype(jnp.bfloat16)
    acc = jnp.dot(h, w5_ref[...], preferred_element_type=jnp.float32)
    o_ref[...] = (acc + b5_ref[...]).astype(o_ref.dtype)


def init_params(key, input_size, hidden_size, num_classes):
    """Deterministic init mimicking nn.Linear (uniform +-1/sqrt(fan_in)), f32."""
    dims = [
        (input_size, hidden_size),
        (hidden_size, hidden_size * 2),
        (hidden_size * 2, hidden_size * 2),
        (hidden_size * 2, hidden_size),
        (hidden_size, num_classes),
    ]
    params = []
    for fan_in, fan_out in dims:
        key, kw, kb = jax.random.split(key, 3)
        bound = 1.0 / (fan_in ** 0.5)
        w = jax.random.uniform(kw, (fan_in, fan_out), jnp.float32, -bound, bound)
        b = jax.random.uniform(kb, (1, fan_out), jnp.float32, -bound, bound)
        params.append((w, b))
    return params


def pad_params(params):
    """One-time prep: zero-pad every feature dim to a multiple of 128 lanes.
    Weights -> bf16 (MXU operands); biases stay f32 (added post-accumulate)."""
    padded = []
    for w, b in params:
        fi, fo = w.shape
        fip, fop = _round_up(fi, LANE), _round_up(fo, LANE)
        wp = jnp.zeros((fip, fop), jnp.bfloat16).at[:fi, :fo].set(
            w.astype(jnp.bfloat16))
        bp = jnp.zeros((1, fop), jnp.float32).at[:, :fo].set(
            b.reshape(1, -1).astype(jnp.float32))
        padded.append((wp, bp))
    return padded


def mlp_forward(x, padded_params, num_classes, *, block_b=None):
    """Run the fused MLP kernel. padded_params = [(W_pad[in_p,out_p] bf16,
    b_pad[1,out_p] f32), ...]. Returns f32 (B, num_classes)."""
    B, F = x.shape
    Fp = padded_params[0][0].shape[0]
    out_p = padded_params[-1][0].shape[1]

    # Batch tile: multiple of the bf16 sublane packing; prefer >=2 grid steps
    # so dimension_semantics=("parallel",) can shard the batch across v7x's
    # two TensorCores. Capped at 512 rows (amortizes per-step overhead while
    # staying far inside v7x's 64 MiB VMEM for these feature widths).
    if block_b is None:
        if B >= 2 * SUBLANE_BF16:
            block_b = min(512, _round_up(pl.cdiv(B, 2), SUBLANE_BF16))
        else:
            block_b = SUBLANE_BF16
    block_b = max(SUBLANE_BF16, _round_up(block_b, SUBLANE_BF16))

    # Round batch up so the grid covers every row (no silent remainder drop).
    Bp = _round_up(B, block_b)
    grid = (Bp // block_b,)

    # Lane-pad features, zero-pad trailing batch rows, cast to bf16.
    xp = jnp.zeros((Bp, Fp), jnp.bfloat16).at[:B, :F].set(x.astype(jnp.bfloat16))

    in_specs = [pl.BlockSpec((block_b, Fp), lambda i: (i, 0))]
    flat_args = [xp]
    for w, b in padded_params:
        # Grid-invariant weights/biases: constant index_map -> fetched once.
        # TODO(synk): pipeline_mode=pl.Buffered(1) would drop the second weight
        # buffer; left at the default double-buffer for broad JAX compatibility.
        in_specs.append(pl.BlockSpec(w.shape, lambda i: (0, 0)))
        in_specs.append(pl.BlockSpec(b.shape, lambda i: (0, 0)))
        flat_args += [w, b]

    out_specs = pl.BlockSpec((block_b, out_p), lambda i: (i, 0))

    flops = 2 * Bp * sum(w.shape[0] * w.shape[1] for w, _ in padded_params)
    bytes_accessed = (
        xp.size * xp.dtype.itemsize
        + sum(w.size * w.dtype.itemsize + b.size * b.dtype.itemsize
              for w, b in padded_params)
        + Bp * out_p * 4)

    out = pl.pallas_call(
        mlp_kernel,
        out_shape=jax.ShapeDtypeStruct((Bp, out_p), jnp.float32),
        grid_spec=pltpu.PrefetchScalarGridSpec(
            num_scalar_prefetch=0,
            grid=grid,
            in_specs=in_specs,
            out_specs=out_specs,
        ),
        compiler_params=pltpu.CompilerParams(
            dimension_semantics=("parallel",),
            vmem_limit_bytes=32 * 1024 * 1024,
        ),
        cost_estimate=pl.CostEstimate(
            flops=flops, transcendentals=0, bytes_accessed=bytes_accessed),
    )(*flat_args)

    # Slice lane-padded output back to the true class count / batch.
    return out[:B, :num_classes]


def mlp_reference_f32(x, params):
    """Pure f32 reference matching the PyTorch module."""
    h = x
    for i, (w, b) in enumerate(params):
        h = h @ w + b
        if i < len(params) - 1:
            h = jnp.maximum(h, 0.0)
    return h


def mlp_reference_bf16(x, padded_params, F, num_classes):
    """Pure-JAX mirror of the kernel arithmetic (bf16 operands, f32 accumulate)."""
    Fp = padded_params[0][0].shape[0]
    h = jnp.zeros((x.shape[0], Fp), jnp.bfloat16).at[:, :F].set(
        x.astype(jnp.bfloat16))
    n = len(padded_params)
    for i, (w, b) in enumerate(padded_params):
        acc = jnp.dot(h, w, preferred_element_type=jnp.float32) + b
        if i < n - 1:
            h = jnp.maximum(acc, 0.0).astype(jnp.bfloat16)
        else:
            h = acc
    return h[:, :num_classes]


if __name__ == "__main__":
    input_size, hidden_size, num_classes = 32, 32, 10

    key = jax.random.PRNGKey(0)
    key, kx = jax.random.split(key)
    params = init_params(key, input_size, hidden_size, num_classes)
    padded = pad_params(params)

    for batch in (8, 40):   # 40 -> padded grid with 2 steps (exercises tiling)
        kx, kb = jax.random.split(kx)
        x = jax.random.normal(kb, (batch, input_size), jnp.float32)

        out = jax.block_until_ready(mlp_forward(x, padded, num_classes))
        assert out.shape == (batch, num_classes)

        # Tight check vs. a pure-JAX mirror of the kernel's bf16/f32 arithmetic.
        ref_bf16 = mlp_reference_bf16(x, padded, input_size, num_classes)
        assert jnp.allclose(out, ref_bf16, atol=2e-2, rtol=2e-2), "bf16 mirror mismatch"

        # Loose check vs. the full-f32 PyTorch-equivalent forward (semantics).
        ref_f32 = mlp_reference_f32(x, params)
        assert jnp.allclose(out, ref_f32, atol=8e-2, rtol=8e-2), "f32 semantics mismatch"

    print("KERNEL_OK")
</pallas_src>

<mosaic_0001>
module attributes {stable_mosaic.version = 11 : i64} {
  func.func @mlp_kernel(%arg0: i32, %arg1: memref<16x128xbf16, #tpu.memory_space<vmem>>, %arg2: memref<128x128xbf16, #tpu.memory_space<vmem>>, %arg3: memref<1x128xf32, #tpu.memory_space<vmem>>, %arg4: memref<128x128xbf16, #tpu.memory_space<vmem>>, %arg5: memref<1x128xf32, #tpu.memory_space<vmem>>, %arg6: memref<128x128xbf16, #tpu.memory_space<vmem>>, %arg7: memref<1x128xf32, #tpu.memory_space<vmem>>, %arg8: memref<128x128xbf16, #tpu.memory_space<vmem>>, %arg9: memref<1x128xf32, #tpu.memory_space<vmem>>, %arg10: memref<128x128xbf16, #tpu.memory_space<vmem>>, %arg11: memref<1x128xf32, #tpu.memory_space<vmem>>, %arg12: memref<16x128xf32, #tpu.memory_space<vmem>>) attributes {dimension_semantics = [#tpu.dimension_semantics<parallel>], iteration_bounds = array<i64: 1>, scalar_prefetch = 0 : i64, scratch_operands = 0 : i64, tpu.core_type = #tpu.core_type<tc>, window_params = [{transform_indices = @transform_0, window_bounds = array<i64: 16, 128>}, {pipeline_mode = #tpu.pipeline_mode<synchronous>, transform_indices = @transform_1, window_bounds = array<i64: 128, 128>}, {pipeline_mode = #tpu.pipeline_mode<synchronous>, transform_indices = @transform_2, window_bounds = array<i64: 1, 128>}, {pipeline_mode = #tpu.pipeline_mode<synchronous>, transform_indices = @transform_3, window_bounds = array<i64: 128, 128>}, {pipeline_mode = #tpu.pipeline_mode<synchronous>, transform_indices = @transform_4, window_bounds = array<i64: 1, 128>}, {pipeline_mode = #tpu.pipeline_mode<synchronous>, transform_indices = @transform_5, window_bounds = array<i64: 128, 128>}, {pipeline_mode = #tpu.pipeline_mode<synchronous>, transform_indices = @transform_6, window_bounds = array<i64: 1, 128>}, {pipeline_mode = #tpu.pipeline_mode<synchronous>, transform_indices = @transform_7, window_bounds = array<i64: 128, 128>}, {pipeline_mode = #tpu.pipeline_mode<synchronous>, transform_indices = @transform_8, window_bounds = array<i64: 1, 128>}, {pipeline_mode = #tpu.pipeline_mode<synchronous>, transform_indices = @transform_9, window_bounds = array<i64: 128, 128>}, {pipeline_mode = #tpu.pipeline_mode<synchronous>, transform_indices = @transform_10, window_bounds = array<i64: 1, 128>}, {transform_indices = @transform_11, window_bounds = array<i64: 16, 128>}]} {
    %c0 = arith.constant 0 : index
    %c0_0 = arith.constant 0 : index
    %0 = vector.load %arg1[%c0, %c0_0] : memref<16x128xbf16, #tpu.memory_space<vmem>>, vector<16x128xbf16>
    %c0_1 = arith.constant 0 : index
    %c0_2 = arith.constant 0 : index
    %1 = vector.load %arg2[%c0_1, %c0_2] : memref<128x128xbf16, #tpu.memory_space<vmem>>, vector<128x128xbf16>
    %cst = arith.constant dense<0.000000e+00> : vector<16x128xf32>
    %2 = tpu.matmul %0, %1, %cst {dimension_numbers = #tpu.dot_dimension_numbers<[1], [0], [0], [1], [0, 0, 1, 1], [], []>} : vector<16x128xbf16>, vector<128x128xbf16>, vector<16x128xf32> -> vector<16x128xf32>
    %c0_3 = arith.constant 0 : index
    %c0_4 = arith.constant 0 : index
    %3 = vector.load %arg3[%c0_3, %c0_4] : memref<1x128xf32, #tpu.memory_space<vmem>>, vector<1x128xf32>
    %4 = vector.broadcast %3 : vector<1x128xf32> to vector<16x128xf32>
    %5 = arith.addf %2, %4 : vector<16x128xf32>
    %cst_5 = arith.constant 0.000000e+00 : f32
    %6 = vector.broadcast %cst_5 : f32 to vector<16x128xf32>
    %7 = arith.maximumf %5, %6 : vector<16x128xf32>
    %8 = arith.truncf %7 : vector<16x128xf32> to vector<16x128xbf16>
    %c0_6 = arith.constant 0 : index
    %c0_7 = arith.constant 0 : index
    %9 = vector.load %arg4[%c0_6, %c0_7] : memref<128x128xbf16, #tpu.memory_space<vmem>>, vector<128x128xbf16>
    %cst_8 = arith.constant dense<0.000000e+00> : vector<16x128xf32>
    %10 = tpu.matmul %8, %9, %cst_8 {dimension_numbers = #tpu.dot_dimension_numbers<[1], [0], [0], [1], [0, 0, 1, 1], [], []>} : vector<16x128xbf16>, vector<128x128xbf16>, vector<16x128xf32> -> vector<16x128xf32>
    %c0_9 = arith.constant 0 : index
    %c0_10 = arith.constant 0 : index
    %11 = vector.load %arg5[%c0_9, %c0_10] : memref<1x128xf32, #tpu.memory_space<vmem>>, vector<1x128xf32>
    %12 = vector.broadcast %11 : vector<1x128xf32> to vector<16x128xf32>
    %13 = arith.addf %10, %12 : vector<16x128xf32>
    %cst_11 = arith.constant 0.000000e+00 : f32
    %14 = vector.broadcast %cst_11 : f32 to vector<16x128xf32>
    %15 = arith.maximumf %13, %14 : vector<16x128xf32>
    %16 = arith.truncf %15 : vector<16x128xf32> to vector<16x128xbf16>
    %c0_12 = arith.constant 0 : index
    %c0_13 = arith.constant 0 : index
    %17 = vector.load %arg6[%c0_12, %c0_13] : memref<128x128xbf16, #tpu.memory_space<vmem>>, vector<128x128xbf16>
    %cst_14 = arith.constant dense<0.000000e+00> : vector<16x128xf32>
    %18 = tpu.matmul %16, %17, %cst_14 {dimension_numbers = #tpu.dot_dimension_numbers<[1], [0], [0], [1], [0, 0, 1, 1], [], []>} : vector<16x128xbf16>, vector<128x128xbf16>, vector<16x128xf32> -> vector<16x128xf32>
    %c0_15 = arith.constant 0 : index
    %c0_16 = arith.constant 0 : index
    %19 = vector.load %arg7[%c0_15, %c0_16] : memref<1x128xf32, #tpu.memory_space<vmem>>, vector<1x128xf32>
    %20 = vector.broadcast %19 : vector<1x128xf32> to vector<16x128xf32>
    %21 = arith.addf %18, %20 : vector<16x128xf32>
    %cst_17 = arith.constant 0.000000e+00 : f32
    %22 = vector.broadcast %cst_17 : f32 to vector<16x128xf32>
    %23 = arith.maximumf %21, %22 : vector<16x128xf32>
    %24 = arith.truncf %23 : vector<16x128xf32> to vector<16x128xbf16>
    %c0_18 = arith.constant 0 : index
    %c0_19 = arith.constant 0 : index
    %25 = vector.load %arg8[%c0_18, %c0_19] : memref<128x128xbf16, #tpu.memory_space<vmem>>, vector<128x128xbf16>
    %cst_20 = arith.constant dense<0.000000e+00> : vector<16x128xf32>
    %26 = tpu.matmul %24, %25, %cst_20 {dimension_numbers = #tpu.dot_dimension_numbers<[1], [0], [0], [1], [0, 0, 1, 1], [], []>} : vector<16x128xbf16>, vector<128x128xbf16>, vector<16x128xf32> -> vector<16x128xf32>
    %c0_21 = arith.constant 0 : index
    %c0_22 = arith.constant 0 : index
    %27 = vector.load %arg9[%c0_21, %c0_22] : memref<1x128xf32, #tpu.memory_space<vmem>>, vector<1x128xf32>
    %28 = vector.broadcast %27 : vector<1x128xf32> to vector<16x128xf32>
    %29 = arith.addf %26, %28 : vector<16x128xf32>
    %cst_23 = arith.constant 0.000000e+00 : f32
    %30 = vector.broadcast %cst_23 : f32 to vector<16x128xf32>
    %31 = arith.maximumf %29, %30 : vector<16x128xf32>
    %32 = arith.truncf %31 : vector<16x128xf32> to vector<16x128xbf16>
    %c0_24 = arith.constant 0 : index
    %c0_25 = arith.constant 0 : index
    %33 = vector.load %arg10[%c0_24, %c0_25] : memref<128x128xbf16, #tpu.memory_space<vmem>>, vector<128x128xbf16>
    %cst_26 = arith.constant dense<0.000000e+00> : vector<16x128xf32>
    %34 = tpu.matmul %32, %33, %cst_26 {dimension_numbers = #tpu.dot_dimension_numbers<[1], [0], [0], [1], [0, 0, 1, 1], [], []>} : vector<16x128xbf16>, vector<128x128xbf16>, vector<16x128xf32> -> vector<16x128xf32>
    %c0_27 = arith.constant 0 : index
    %c0_28 = arith.constant 0 : index
    %35 = vector.load %arg11[%c0_27, %c0_28] : memref<1x128xf32, #tpu.memory_space<vmem>>, vector<1x128xf32>
    %36 = vector.broadcast %35 : vector<1x128xf32> to vector<16x128xf32>
    %37 = arith.addf %34, %36 : vector<16x128xf32>
    %c0_29 = arith.constant 0 : index
    %c0_30 = arith.constant 0 : index
    %38 = vector.load %arg12[%c0_29, %c0_30] : memref<16x128xf32, #tpu.memory_space<vmem>>, vector<16x128xf32>
    tpu.vector_store %arg12[%c0_29, %c0_30], %37 {strides = array<i32>} : memref<16x128xf32, #tpu.memory_space<vmem>>, vector<16x128xf32>,
    return
  }
  func.func @transform_0(%arg0: i32) -> (i32, i32) {
    %c0_i32 = arith.constant 0 : i32
    %c0_i32_0 = arith.constant 0 : i32
    return %arg0, %c0_i32 : i32, i32
  }
  func.func @transform_1(%arg0: i32) -> (i32, i32) {
    %c0_i32 = arith.constant 0 : i32
    %c0_i32_0 = arith.constant 0 : i32
    %c0_i32_1 = arith.constant 0 : i32
    return %c0_i32, %c0_i32_0 : i32, i32
  }
  func.func @transform_2(%arg0: i32) -> (i32, i32) {
    %c0_i32 = arith.constant 0 : i32
    %c0_i32_0 = arith.constant 0 : i32
    %c0_i32_1 = arith.constant 0 : i32
    return %c0_i32, %c0_i32_0 : i32, i32
  }
  func.func @transform_3(%arg0: i32) -> (i32, i32) {
    %c0_i32 = arith.constant 0 : i32
    %c0_i32_0 = arith.constant 0 : i32
    %c0_i32_1 = arith.constant 0 : i32
    return %c0_i32, %c0_i32_0 : i32, i32
  }
  func.func @transform_4(%arg0: i32) -> (i32, i32) {
    %c0_i32 = arith.constant 0 : i32
    %c0_i32_0 = arith.constant 0 : i32
    %c0_i32_1 = arith.constant 0 : i32
    return %c0_i32, %c0_i32_0 : i32, i32
  }
  func.func @transform_5(%arg0: i32) -> (i32, i32) {
    %c0_i32 = arith.constant 0 : i32
    %c0_i32_0 = arith.constant 0 : i32
    %c0_i32_1 = arith.constant 0 : i32
    return %c0_i32, %c0_i32_0 : i32, i32
  }
  func.func @transform_6(%arg0: i32) -> (i32, i32) {
    %c0_i32 = arith.constant 0 : i32
    %c0_i32_0 = arith.constant 0 : i32
    %c0_i32_1 = arith.constant 0 : i32
    return %c0_i32, %c0_i32_0 : i32, i32
  }
  func.func @transform_7(%arg0: i32) -> (i32, i32) {
    %c0_i32 = arith.constant 0 : i32
    %c0_i32_0 = arith.constant 0 : i32
    %c0_i32_1 = arith.constant 0 : i32
    return %c0_i32, %c0_i32_0 : i32, i32
  }
  func.func @transform_8(%arg0: i32) -> (i32, i32) {
    %c0_i32 = arith.constant 0 : i32
    %c0_i32_0 = arith.constant 0 : i32
    %c0_i32_1 = arith.constant 0 : i32
    return %c0_i32, %c0_i32_0 : i32, i32
  }
  func.func @transform_9(%arg0: i32) -> (i32, i32) {
    %c0_i32 = arith.constant 0 : i32
    %c0_i32_0 = arith.constant 0 : i32
    %c0_i32_1 = arith.constant 0 : i32
    return %c0_i32, %c0_i32_0 : i32, i32
  }
  func.func @transform_10(%arg0: i32) -> (i32, i32) {
    %c0_i32 = arith.constant 0 : i32
    %c0_i32_0 = arith.constant 0 : i32
    %c0_i32_1 = arith.constant 0 : i32
    return %c0_i32, %c0_i32_0 : i32, i32
  }
  func.func @transform_11(%arg0: i32) -> (i32, i32) {
    %c0_i32 = arith.constant 0 : i32
    %c0_i32_0 = arith.constant 0 : i32
    return %arg0, %c0_i32 : i32, i32
  }
}

</mosaic_0001>

<bundles_post_ra>
// kernel: tpu_custom_call.1
= control target key start
LH: loop header
LB: loop body
LE: loop exit
PB: predicated region body
PF: predicated region fallthrough
CT: control target
= control target key end

     0   :  { %16 = vsyncpa [#allocation3], 0  ;;  %s1296_s0 = inlined_call_operand.hbm [shape: bf16[16,128], index: 0, kind: input, shape index: {}]   ;;  %s1297_s1 = inlined_call_operand.hbm [shape: bf16[128,128], index: 1, kind: input, shape index: {}]   ;;  %s1298_s2 = inlined_call_operand.vmem [shape: f32[1,128], index: 2, kind: input, shape index: {}]   ;;  %s1299_s3 = inlined_call_operand.hbm [shape: bf16[128,128], index: 3, kind: input, shape index: {}]   ;;  %s1300_s4 = inlined_call_operand.vmem [shape: f32[1,128], index: 4, kind: input, shape index: {}]   ;;  %s1301_s5 = inlined_call_operand.hbm [shape: bf16[128,128], index: 5, kind: input, shape index: {}]   ;;  %s1302_s6 = inlined_call_operand.vmem [shape: f32[1,128], index: 6, kind: input, shape index: {}]   ;;  %s1303_s7 = inlined_call_operand.hbm [shape: bf16[128,128], index: 7, kind: input, shape index: {}]   ;;  %s1304_s8 = inlined_call_operand.vmem [shape: f32[1,128], index: 8, kind: input, shape index: {}]   ;;  %s1305_s9 = inlined_call_operand.hbm [shape: bf16[128,128], index: 9, kind: input, shape index: {}]   ;;  %s1306_s10 = inlined_call_operand.vmem [shape: f32[1,128], index: 10, kind: input, shape index: {}]   ;;  %s1307_s11 = inlined_call_operand.hbm [shape: f32[16,128], index: 11, kind: output, shape index: {}]  }
   0x1   :  { %17 = vsyncpa [#allocation6], 0 }
   0x2   :  { %18 = vsyncpa [#allocation9], 0 }
   0x3   :  { %19 = vsyncpa [#allocation12], 0 }
   0x4   :  { %20 = vsyncpa [#allocation4], 0  ;;  %s1119_s17 = smov [#allocation5]   ;;  %s1120_s19 = smov [#allocation8]  }
   0x5   :  { %s38_s18 = sshll.u32 %s1119_s17, 4  ;;  %s66_s20 = sshll.u32 %s1120_s19, 4  ;;  %s39_s18 = int_to_ptr.vmem [resolvable:$true] %s38_s18  ;;  %s67_s20 = int_to_ptr.vmem [resolvable:$true] %s66_s20 }
   0x6   :  { %s977_s21 = scalar_lea.vmem %s39_s18, 1024  ;;  %p982_p1 = scmp.lt.s32.totalorder %s39_s18, %s39_s18 }
   0x7   :  { %p978_p0 = scmp.ne.s32.totalorder %s39_s18, %s977_s21  ;;  %p983_p2 = scmp.lt.s32.totalorder %s977_s21, %s977_s21 }
   0x9   :  { %p984_p3 = por %p983_p2, %p982_p1 }
   0xb   :  { %p985_p4 = pnand %p984_p3, %p978_p0 }
   0xd   :  { %988 = shalt.err (!%p985_p4)
}
   0xe   :  { %s1121_s22 = smov 64   ;;  %s1122_s23 = smov 4  }
   0xf   :  { %44 = dma.hbm_to_vmem [thread:$0]  %s1297_s1, 1024, %s39_s18, [#allocation6], %s1121_s22, %s1121_s22, %s1122_s23  }
  0x10   :  { %s997_s26 = scalar_lea.vmem %s67_s20, 1024  ;;  %p1002_p6 = scmp.lt.s32.totalorder %s67_s20, %s67_s20 }
  0x11   :  { %p998_p5 = scmp.ne.s32.totalorder %s67_s20, %s997_s26  ;;  %p1003_p7 = scmp.lt.s32.totalorder %s997_s26, %s997_s26 }
  0x13   :  { %p1004_p8 = por %p1003_p7, %p1002_p6 }
  0x15   :  { %p1005_p9 = pnand %p1004_p8, %p998_p5 }
  0x17   :  { %1008 = shalt.err (!%p1005_p9)
}
  0x18   :  { %72 = dma.hbm_to_vmem [thread:$0]  %s1301_s5, 1024, %s67_s20, [#allocation9], %s1121_s22, %s1121_s22, %s1122_s23  }
  0x19   :  { %s1123_s29 = smov [#allocation2]   ;;  %s1124_s12 = smov [#allocation7]  }
  0x1a   :  { %s26_s30 = sshll.u32 %s1123_s29, 4  ;;  %s52_s13 = sshll.u32 %s1124_s12, 4  ;;  %s27_s30 = int_to_ptr.vmem [resolvable:$true] %s26_s30  ;;  %s53_s13 = int_to_ptr.vmem [resolvable:$true] %s52_s13 }
  0x1b   :  { %s1017_s1 = scalar_lea.vmem %s27_s30, 128  ;;  %p1022_p11 = scmp.lt.s32.totalorder %s27_s30, %s27_s30 }
  0x1c   :  { %p1018_p10 = scmp.ne.s32.totalorder %s27_s30, %s1017_s1  ;;  %p1023_p12 = scmp.lt.s32.totalorder %s1017_s1, %s1017_s1 }
  0x1e   :  { %p1024_p13 = por %p1023_p12, %p1022_p11 }
  0x20   :  { %p1025_p0 = pnand %p1024_p13, %p1018_p10 }
  0x22   :  { %1028 = shalt.err (!%p1025_p0)
}
  0x23   :  { %32 = dma.hbm_to_vmem [thread:$0]  %s1296_s0, 128, %s27_s30, [#allocation3], %s1121_s22, %s1121_s22, %s1122_s23  }
  0x24   :  { %s1037_s5 = scalar_lea.vmem %s53_s13, 1024  ;;  %p1042_p2 = scmp.lt.s32.totalorder %s53_s13, %s53_s13 }
  0x25   :  { %p1038_p1 = scmp.ne.s32.totalorder %s53_s13, %s1037_s5  ;;  %p1043_p3 = scmp.lt.s32.totalorder %s1037_s5, %s1037_s5 }
  0x27   :  { %p1044_p4 = por %p1043_p3, %p1042_p2 }
  0x29   :  { %p1045_p5 = pnand %p1044_p4, %p1038_p1 }
  0x2b   :  { %1048 = shalt.err (!%p1045_p5)
}
  0x2c   :  { %58 = dma.hbm_to_vmem [thread:$0]  %s1299_s3, 1024, %s53_s13, [#allocation6], %s1121_s22, %s1121_s22, %s1122_s23  }
  0x2d   :  { %s1125_s18 = smov [#allocation10]   ;;  %s1126_s20 = smov [#allocation11]  }
  0x2e   :  { %s80_s19 = sshll.u32 %s1125_s18, 4  ;;  %s94_s21 = sshll.u32 %s1126_s20, 4  ;;  %s81_s19 = int_to_ptr.vmem [resolvable:$true] %s80_s19  ;;  %s95_s21 = int_to_ptr.vmem [resolvable:$true] %s94_s21 }
  0x2f   :  { %s1057_s0 = scalar_lea.vmem %s81_s19, 1024  ;;  %p1062_p7 = scmp.lt.s32.totalorder %s81_s19, %s81_s19 }
  0x30   :  { %p1058_p6 = scmp.ne.s32.totalorder %s81_s19, %s1057_s0  ;;  %p1063_p8 = scmp.lt.s32.totalorder %s1057_s0, %s1057_s0 }
  0x32   :  { %p1064_p9 = por %p1063_p8, %p1062_p7 }
  0x34   :  { %p1065_p10 = pnand %p1064_p9, %p1058_p6 }
  0x36   :  { %1068 = shalt.err (!%p1065_p10)
}
  0x37   :  { %86 = dma.hbm_to_vmem [thread:$0]  %s1303_s7, 1024, %s81_s19, [#allocation9], %s1121_s22, %s1121_s22, %s1122_s23  }
  0x38   :  { %s1077_s3 = scalar_lea.vmem %s95_s21, 1024  ;;  %p1082_p12 = scmp.lt.s32.totalorder %s95_s21, %s95_s21 }
  0x39   :  { %p1078_p11 = scmp.ne.s32.totalorder %s95_s21, %s1077_s3  ;;  %p1083_p13 = scmp.lt.s32.totalorder %s1077_s3, %s1077_s3 }
  0x3b   :  { %p1084_p0 = por %p1083_p13, %p1082_p12 }
  0x3d   :  { %p1085_p1 = pnand %p1084_p0, %p1078_p11 }
  0x3f   :  { %1088 = shalt.err (!%p1085_p1)
}
  0x40   :  { %100 = dma.hbm_to_vmem [thread:$0]  %s1305_s9, 1024, %s95_s21, [#allocation12], %s1121_s22, %s1121_s22, %s1122_s23  }
  0x41   :  { %1109 = dma.done.wait [#allocation3], 128  }
  0x42   :  { %1110 = vsyncadd [#allocation3], 4294967168 }
  0x43   :  { %1111 = dma.done.wait [#allocation6], 2048  }
  0x44   :  { %1112 = vsyncadd [#allocation6], 4294965248 }
  0x45   :  { %1113 = dma.done.wait [#allocation9], 2048  }
  0x46   :  { %1114 = vsyncadd [#allocation9], 4294965248 }
  0x47   :  { %1115 = dma.done.wait [#allocation12], 1024  }
  0x48   :  { %1116 = vsyncadd [#allocation12], 4294966272  ;;  %v1127_v0 = vmov 0.0   ;;  %vm1128_vm0 = vmmov 0   ;;  %v928_v1 = vld [vmem:[#allocation5 + $0x38] sm:$0xff]   ;;  %v929_v2 = vld [vmem:[#allocation5 + $0x30] sm:$0xff]  }
  0x49   :  { %815 = vmatprep.subr.bf16.mxu0 %v1127_v0  ;;  %831 = vmatprep.mubr.msk.bf16.mxu0 %vm1128_vm0, %v1127_v0  ;;  %v930_v3 = vld [vmem:[#allocation5 + $0x28] sm:$0xff]   ;;  %v937_v4 = vld [vmem:[#allocation7 + $0x38] sm:$0xff]   ;;  %v931_v5 = vld [vmem:[#allocation5 + $0x20] sm:$0xff]   ;;  %s1129_s12 = smov [#allocation13]  }
  0x4a   :  { %835 = vmatprep.subr.bf16.mxu1 %v1127_v0  ;;  %851 = vmatprep.mubr.msk.bf16.mxu1 %vm1128_vm0, %v1127_v0  ;;  %v938_v6 = vld [vmem:[#allocation7 + $0x30] sm:$0xff]   ;;  %v932_v7 = vld [vmem:[#allocation5 + $0x18] sm:$0xff]   ;;  %v939_v8 = vld [vmem:[#allocation7 + $0x28] sm:$0xff]   ;;  %s709_s13 = sshll.u32 %s1129_s12, 4  ;;  %s710_s13 = int_to_ptr.vmem [resolvable:$true] %s709_s13 }
  0x4b   :  { %816 = vmatpush3.bf16.msra.mxu0 %v928_v1  ;;  %836 = vmatpush3.bf16.msra.mxu1 %v937_v4  ;;  %v933_v9 = vld [vmem:[#allocation5 + $0x10] sm:$0xff]   ;;  %v940_v10 = vld [vmem:[#allocation7 + $0x20] sm:$0xff]   ;;  %v934_v11 = vld [vmem:[#allocation5 + $0x8] sm:$0xff]   ;;  %p1094_p3 = scmp.lt.s32.totalorder %s710_s13, %s710_s13 }
  0x4c   :  { %817 = vmatprep.subr.bf16.mxu0 %v1127_v0  ;;  %837 = vmatprep.subr.bf16.mxu1 %v1127_v0  ;;  %v941_v12 = vld [vmem:[#allocation7 + $0x18] sm:$0xff]   ;;  %v935_v13 = vld [vmem:[#allocation5] sm:$0xff]   ;;  %v942_v15 = vld [vmem:[#allocation7 + $0x10] sm:$0xff]  }
  0x4d   :  { %v936_v14 = vld [vmem:[#allocation2] sm:$0xff]   ;;  %v943_v16 = vld [vmem:[#allocation7 + $0x8] sm:$0xff]   ;;  %v944_v17 = vld [vmem:[#allocation7] sm:$0xff]  }
  0x4e   :  { %v945_v18 = vld [vmem:[#allocation8 + $0x38] sm:$0xff]   ;;  %v946_v19 = vld [vmem:[#allocation8 + $0x30] sm:$0xff]   ;;  %v947_v20 = vld [vmem:[#allocation8 + $0x28] sm:$0xff]  }
  0x4f   :  { %818 = vmatpush3.bf16.msra.mxu0 %v929_v2  ;;  %838 = vmatpush3.bf16.msra.mxu1 %v938_v6  ;;  %v948_v21 = vld [vmem:[#allocation8 + $0x20] sm:$0xff]   ;;  %v949_v22 = vld [vmem:[#allocation8 + $0x18] sm:$0xff]   ;;  %v950_v33 = vld [vmem:[#allocation8 + $0x10] sm:$0xff]  }
  0x50   :  { %819 = vmatprep.subr.bf16.mxu0 %v1127_v0  ;;  %839 = vmatprep.subr.bf16.mxu1 %v1127_v0  ;;  %v724_v23 = vld [vmem:[%s1298_s2] ss:$0 sm:$0xff]  ;;  %v951_v34 = vld [vmem:[#allocation8 + $0x8] sm:$0xff]   ;;  %v952_v35 = vld [vmem:[#allocation8] sm:$0xff]  }
  0x51   :  { %v953_v36 = vld [vmem:[#allocation10 + $0x38] sm:$0xff]   ;;  %v954_v37 = vld [vmem:[#allocation10 + $0x30] sm:$0xff]   ;;  %v955_v38 = vld [vmem:[#allocation10 + $0x28] sm:$0xff]  }
  0x52   :  { %v956_v39 = vld [vmem:[#allocation10 + $0x20] sm:$0xff]   ;;  %v957_v40 = vld [vmem:[#allocation10 + $0x18] sm:$0xff]   ;;  %v958_v51 = vld [vmem:[#allocation10 + $0x10] sm:$0xff]  }
  0x53   :  { %820 = vmatpush3.bf16.msra.mxu0 %v930_v3  ;;  %840 = vmatpush3.bf16.msra.mxu1 %v939_v8  ;;  %v734_v41 = vld [vmem:[%s1300_s4] ss:$0 sm:$0xff]  ;;  %v959_v52 = vld [vmem:[#allocation10 + $0x8] sm:$0xff]   ;;  %v960_v53 = vld [vmem:[#allocation10] sm:$0xff]  }
  0x54   :  { %821 = vmatprep.subr.bf16.mxu0 %v1127_v0  ;;  %841 = vmatprep.subr.bf16.mxu1 %v1127_v0  ;;  %v961_v54 = vld [vmem:[#allocation11 + $0x38] sm:$0xff]   ;;  %v962_v55 = vld [vmem:[#allocation11 + $0x30] sm:$0xff]   ;;  %v963_v56 = vld [vmem:[#allocation11 + $0x28] sm:$0xff]  }
  0x55   :  { %v964_v57 = vld [vmem:[#allocation11 + $0x20] sm:$0xff]   ;;  %v965_v58 = vld [vmem:[#allocation11 + $0x18] sm:$0xff]   ;;  %v966_v6 = vld [vmem:[#allocation11 + $0x10] sm:$0xff]  }
  0x56   :  { %v743_v59 = vld [vmem:[%s1302_s6] ss:$0 sm:$0xff]  ;;  %v968_v8 = vld [vmem:[#allocation11] sm:$0xff]  }
  0x57   :  { %822 = vmatpush3.bf16.msra.mxu0 %v931_v5  ;;  %842 = vmatpush3.bf16.msra.mxu1 %v940_v10 }
  0x58   :  { %823 = vmatprep.subr.bf16.mxu0 %v1127_v0  ;;  %843 = vmatprep.subr.bf16.mxu1 %v1127_v0 }
  0x5b   :  { %824 = vmatpush3.bf16.msra.mxu0 %v932_v7  ;;  %844 = vmatpush3.bf16.msra.mxu1 %v941_v12  ;;  %v967_v7 = vld [vmem:[#allocation11 + $0x8] sm:$0xff]  }
  0x5c   :  { %825 = vmatprep.subr.bf16.mxu0 %v1127_v0  ;;  %845 = vmatprep.subr.bf16.mxu1 %v1127_v0 }
  0x5f   :  { %826 = vmatpush3.bf16.msra.mxu0 %v933_v9  ;;  %846 = vmatpush3.bf16.msra.mxu1 %v942_v15  ;;  %v752_v9 = vld [vmem:[%s1304_s8] ss:$0 sm:$0xff]  ;;  %s1089_s8 = scalar_lea.vmem %s710_s13, 256 }
  0x60   :  { %827 = vmatprep.subr.bf16.mxu0 %v1127_v0  ;;  %847 = vmatprep.subr.bf16.mxu1 %v1127_v0  ;;  %p1090_p2 = scmp.ne.s32.totalorder %s710_s13, %s1089_s8  ;;  %p1095_p4 = scmp.lt.s32.totalorder %s1089_s8, %s1089_s8 }
  0x62   :  { %p1096_p5 = por %p1095_p4, %p1094_p3 }
  0x63   :  { %828 = vmatpush3.bf16.msra.mxu0 %v934_v11  ;;  %848 = vmatpush3.bf16.msra.mxu1 %v943_v16 }
  0x64   :  { %829 = vmatprep.subr.bf16.mxu0 %v1127_v0  ;;  %849 = vmatprep.subr.bf16.mxu1 %v1127_v0  ;;  %p1097_p6 = pnand %p1096_p5, %p1090_p2 }
  0x67   :  { %830 = vmatpush3.bf16.msra.mxu0 %v935_v13  ;;  %850 = vmatpush3.bf16.msra.mxu1 %v944_v17 }
  0x68   :  { %855 = vmatprep.subr.bf16.mxu0 %v1127_v0  ;;  %875 = vmatprep.subr.bf16.mxu1 %v1127_v0 }
  0x6a   :  { %832 = vmatmul.mubr.bf16.vlgmr.msra.gmra.mxu0 %v936_v14 }
  0x6b   :  { %871 = vmatprep.mubr.msk.bf16.mxu0 %vm1128_vm0, %v1127_v0  ;;  %856 = vmatpush3.bf16.msra.mxu0 %v945_v18 }
  0x6c   :  { %857 = vmatprep.subr.bf16.mxu0 %v1127_v0 }
  0x6f   :  { %858 = vmatpush3.bf16.msra.mxu0 %v946_v19 }
  0x70   :  { %859 = vmatprep.subr.bf16.mxu0 %v1127_v0 }
  0x73   :  { %860 = vmatpush3.bf16.msra.mxu0 %v947_v20 }
  0x74   :  { %861 = vmatprep.subr.bf16.mxu0 %v1127_v0 }
  0x77   :  { %862 = vmatpush3.bf16.msra.mxu0 %v948_v21 }
  0x78   :  { %863 = vmatprep.subr.bf16.mxu0 %v1127_v0 }
  0x7b   :  { %864 = vmatpush3.bf16.msra.mxu0 %v949_v22 }
  0x7c   :  { %865 = vmatprep.subr.bf16.mxu0 %v1127_v0 }
  0x7f   :  { %866 = vmatpush3.bf16.msra.mxu0 %v950_v33 }
  0x80   :  { %867 = vmatprep.subr.bf16.mxu0 %v1127_v0 }
  0x83   :  { %868 = vmatpush3.bf16.msra.mxu0 %v951_v34 }
  0x84   :  { %869 = vmatprep.subr.bf16.mxu0 %v1127_v0 }
  0x87   :  { %870 = vmatpush3.bf16.msra.mxu0 %v952_v35 }
  0x88   :  { %895 = vmatprep.subr.bf16.mxu0 %v1127_v0 }
 0x12a   :  { %v235_v24 = vpop.f32.mrf.mxu0 }
 0x12b   :  { %v236_v26 = vadd.f32 %v724_v23, %v235_v24 }
 0x12c   :  { %v833_v25 = vpop.f32.mrf.mxu0 }
 0x12d   :  { %v242_v30 = vmax.f32 %v236_v26, 0.0 }
 0x12e   :  { %v238_v27 = vpop.f32.mrf.mxu0 }
 0x12f   :  { %v239_v28 = vadd.f32 %v724_v23, %v238_v27 }
 0x130   :  { %v834_v29 = vpop.f32.mrf.mxu0 }
 0x131   :  { %v243_v31 = vmax.f32 %v239_v28, 0.0 }
 0x133   :  { %v244_v32 = vpack.c.bf16 %v243_v31, %v242_v30 }
 0x135   :  { %852 = vmatmul.mubr.bf16.vlgmr.msra.gmra.mxu1 %v244_v32 }
 0x136   :  { %891 = vmatprep.mubr.msk.bf16.mxu1 %vm1128_vm0, %v1127_v0  ;;  %876 = vmatpush3.bf16.msra.mxu1 %v953_v36 }
 0x137   :  { %877 = vmatprep.subr.bf16.mxu1 %v1127_v0 }
 0x13a   :  { %878 = vmatpush3.bf16.msra.mxu1 %v954_v37 }
 0x13b   :  { %879 = vmatprep.subr.bf16.mxu1 %v1127_v0 }
 0x13e   :  { %880 = vmatpush3.bf16.msra.mxu1 %v955_v38 }
 0x13f   :  { %881 = vmatprep.subr.bf16.mxu1 %v1127_v0 }
 0x142   :  { %882 = vmatpush3.bf16.msra.mxu1 %v956_v39 }
 0x143   :  { %883 = vmatprep.subr.bf16.mxu1 %v1127_v0 }
 0x146   :  { %884 = vmatpush3.bf16.msra.mxu1 %v957_v40 }
 0x147   :  { %885 = vmatprep.subr.bf16.mxu1 %v1127_v0 }
 0x14a   :  { %886 = vmatpush3.bf16.msra.mxu1 %v958_v51 }
 0x14b   :  { %887 = vmatprep.subr.bf16.mxu1 %v1127_v0 }
 0x14e   :  { %888 = vmatpush3.bf16.msra.mxu1 %v959_v52 }
 0x14f   :  { %889 = vmatprep.subr.bf16.mxu1 %v1127_v0 }
 0x152   :  { %890 = vmatpush3.bf16.msra.mxu1 %v960_v53 }
 0x1f5   :  { %v350_v42 = vpop.f32.mrf.mxu1 }
 0x1f6   :  { %v351_v44 = vadd.f32 %v734_v41, %v350_v42 }
 0x1f7   :  { %v853_v43 = vpop.f32.mrf.mxu1 }
 0x1f8   :  { %v357_v48 = vmax.f32 %v351_v44, 0.0 }
 0x1f9   :  { %v353_v45 = vpop.f32.mrf.mxu1 }
 0x1fa   :  { %v354_v46 = vadd.f32 %v734_v41, %v353_v45 }
 0x1fb   :  { %v854_v47 = vpop.f32.mrf.mxu1 }
 0x1fc   :  { %v358_v49 = vmax.f32 %v354_v46, 0.0 }
 0x1fe   :  { %v359_v50 = vpack.c.bf16 %v358_v49, %v357_v48 }
 0x200   :  { %872 = vmatmul.mubr.bf16.vlgmr.msra.gmra.mxu0 %v359_v50 }
 0x201   :  { %911 = vmatprep.mubr.msk.bf16.mxu0 %vm1128_vm0, %v1127_v0  ;;  %896 = vmatpush3.bf16.msra.mxu0 %v961_v54 }
 0x202   :  { %897 = vmatprep.subr.bf16.mxu0 %v1127_v0 }
 0x205   :  { %898 = vmatpush3.bf16.msra.mxu0 %v962_v55 }
 0x206   :  { %899 = vmatprep.subr.bf16.mxu0 %v1127_v0 }
 0x209   :  { %900 = vmatpush3.bf16.msra.mxu0 %v963_v56 }
 0x20a   :  { %901 = vmatprep.subr.bf16.mxu0 %v1127_v0 }
 0x20d   :  { %902 = vmatpush3.bf16.msra.mxu0 %v964_v57 }
 0x20e   :  { %903 = vmatprep.subr.bf16.mxu0 %v1127_v0 }
 0x211   :  { %904 = vmatpush3.bf16.msra.mxu0 %v965_v58 }
 0x212   :  { %905 = vmatprep.subr.bf16.mxu0 %v1127_v0 }
 0x215   :  { %906 = vmatpush3.bf16.msra.mxu0 %v966_v6 }
 0x216   :  { %907 = vmatprep.subr.bf16.mxu0 %v1127_v0 }
 0x219   :  { %908 = vmatpush3.bf16.msra.mxu0 %v967_v7 }
 0x21a   :  { %909 = vmatprep.subr.bf16.mxu0 %v1127_v0  ;;  %v761_v0 = vld [vmem:[%s1306_s10] ss:$0 sm:$0xff] }
 0x21d   :  { %910 = vmatpush3.bf16.msra.mxu0 %v968_v8 }
 0x2c0   :  { %v465_v60 = vpop.f32.mrf.mxu0 }
 0x2c1   :  { %v466_v62 = vadd.f32 %v743_v59, %v465_v60 }
 0x2c2   :  { %v873_v61 = vpop.f32.mrf.mxu0 }
 0x2c3   :  { %v472_v3 = vmax.f32 %v466_v62, 0.0 }
 0x2c4   :  { %v468_v63 = vpop.f32.mrf.mxu0 }
 0x2c5   :  { %v469_v1 = vadd.f32 %v743_v59, %v468_v63 }
 0x2c6   :  { %v874_v2 = vpop.f32.mrf.mxu0 }
 0x2c7   :  { %v473_v4 = vmax.f32 %v469_v1, 0.0 }
 0x2c9   :  { %v474_v5 = vpack.c.bf16 %v473_v4, %v472_v3 }
 0x2cb   :  { %892 = vmatmul.mubr.bf16.vlgmr.msra.gmra.mxu1 %v474_v5 }
 0x38b   :  { %v580_v10 = vpop.f32.mrf.mxu1 }
 0x38c   :  { %v581_v12 = vadd.f32 %v752_v9, %v580_v10 }
 0x38d   :  { %v893_v11 = vpop.f32.mrf.mxu1 }
 0x38e   :  { %v587_v16 = vmax.f32 %v581_v12, 0.0 }
 0x38f   :  { %v583_v13 = vpop.f32.mrf.mxu1 }
 0x390   :  { %v584_v14 = vadd.f32 %v752_v9, %v583_v13 }
 0x391   :  { %v894_v15 = vpop.f32.mrf.mxu1 }
 0x392   :  { %v588_v17 = vmax.f32 %v584_v14, 0.0 }
 0x394   :  { %v589_v18 = vpack.c.bf16 %v588_v17, %v587_v16 }
 0x396   :  { %912 = vmatmul.mubr.bf16.vlgmr.msra.gmra.mxu0 %v589_v18 }
 0x456   :  { %v695_v19 = vpop.f32.mrf.mxu0 }
 0x457   :  { %v696_v20 = vadd.f32 %v761_v0, %v695_v19 }
 0x458   :  { %v913_v21 = vpop.f32.mrf.mxu0 }
 0x459   :  { %702 = vst [vmem:[#allocation13] sm:$0xff] %v696_v20 }
 0x45a   :  { %v698_v22 = vpop.f32.mrf.mxu0 }
 0x45b   :  { %v699_v23 = vadd.f32 %v761_v0, %v698_v22 }
 0x45c   :  { %v914_v24 = vpop.f32.mrf.mxu0 }
 0x45d   :  { %703 = vst [vmem:[#allocation13 + $0x8] sm:$0xff] %v699_v23 }
 0x45e   :  { %1100 = shalt.err (!%p1097_p6)
}
 0x45f   :  { %s1130_s1 = smov 128   ;;  %s1131_s10 = smov 8  }
 0x460   :  { %715 = dma.vmem_to_hbm [thread:$0]  %s710_s13, 256, %s1307_s11, [#allocation4], %s1130_s1, %s1130_s1, %s1131_s10  }
 0x461   :  { %1117 = dma.done.wait [#allocation4], 256  }
 0x462   :  { %1118 = vsyncadd [#allocation4], 4294967040 }
 0x463   :  { %719 = vsyncpa [#allocation3], 1 }
 0x464   :  { %720 = vsyncpa [#allocation6], 1 }
 0x465   :  { %721 = vsyncpa [#allocation9], 1 }
 0x466   :  { %722 = vsyncpa [#allocation12], 1 }
 0x467   :  { %723 = vsyncpa [#allocation4], 1 }

</bundles_post_ra>
